<compile_context>
chip_gen: v5e
topology: v5e:2x2
jax: 0.10.0
libtpu: 0.0.40
codegen_flags: <defaults>
</compile_context>

<pallas_src>
import functools

import jax
import jax.numpy as jnp
import numpy as np
from jax.experimental import pallas as pl
from jax.experimental.pallas import tpu as pltpu


def _synth_attn_kernel(x_ref, w1_ref, b1_ref, wv_ref, bv_ref,
                       w2_ref, b2_ref, wp_ref, bp_ref, o_ref,
                       *, n_head):
    x = x_ref[...]                                            # (T, C) bf16
    T, C = x.shape
    dk = C // n_head

    # Full-width MXU matmuls (bf16 inputs, f32 accumulate, K = C).
    h1 = jnp.maximum(
        jnp.dot(x, w1_ref[...], preferred_element_type=jnp.float32) + b1_ref[...],
        0.0)                                                  # (T, C) f32
    v = (jnp.dot(x, wv_ref[...], preferred_element_type=jnp.float32)
         + bv_ref[...]).astype(jnp.bfloat16)                  # (T, C) bf16

    # Fused score matmul: stack heads along sublanes, one (H*T, dk) @ (dk, T).
    # w2 is shared across heads, so this amortizes the MXU weight push n_head x.
    h1_stacked = jnp.concatenate(
        [h1[:, h * dk:(h + 1) * dk] for h in range(n_head)], axis=0
    ).astype(jnp.bfloat16)                                    # (H*T, dk)
    s = (jnp.dot(h1_stacked, w2_ref[...],
                 preferred_element_type=jnp.float32)
         + b2_ref[...])                                       # (H*T, T) f32

    # Causal mask, shared across heads: keep where col <= (row mod T).
    HT = n_head * T
    row = jax.lax.broadcasted_iota(jnp.int32, (HT, T), 0) % T
    col = jax.lax.broadcasted_iota(jnp.int32, (HT, T), 1)
    s = jnp.where(col <= row, s, jnp.float32(-1e10))

    # Softmax over keys in f32; normalization divide goes to the EUP.
    m = jnp.max(s, axis=-1, keepdims=True)
    e = jnp.exp(s - m)
    p = (e * pl.reciprocal(jnp.sum(e, axis=-1, keepdims=True), approx=True)
         ).astype(jnp.bfloat16)                               # (H*T, T)

    # Per-head attention x value, projection accumulated per head (no concat).
    acc = jnp.zeros((T, C), jnp.float32)
    for h in range(n_head):                                   # static unroll
        p_h = p[h * T:(h + 1) * T, :]                         # (T, T) sublane slice
        v_h = v[:, h * dk:(h + 1) * dk]                       # (T, dk)
        y_h = jnp.dot(p_h, v_h,
                      preferred_element_type=jnp.float32).astype(jnp.bfloat16)
        acc = acc + jnp.dot(y_h, wp_ref[h],                   # wp head-major (H, dk, C)
                            preferred_element_type=jnp.float32)
    o_ref[...] = (acc + bp_ref[...]).astype(o_ref.dtype)


def synthesizer_attention(x, params, n_head):
    """x: (B, T, C) float32.  params: dict of pre-transposed (in, out) weights."""
    B, T, C = x.shape
    dk, S = params["w2"].shape
    assert T <= S, "forward requires T <= block_size - 1"
    assert C % n_head == 0 and C // n_head == dk

    # bf16 matmul operands; biases stay f32 (added after f32 accumulation).
    xb = x.astype(jnp.bfloat16)
    w1 = params["w1"].astype(jnp.bfloat16)                    # (C, C)
    wv = params["wv"].astype(jnp.bfloat16)                    # (C, C)
    w2 = params["w2"][:, :T].astype(jnp.bfloat16)             # (dk, T)  slice before MXU
    wp = params["wp"].reshape(n_head, dk, C).astype(jnp.bfloat16)  # head-major
    b1 = params["b1"].astype(jnp.float32)                     # (1, C)
    bv = params["bv"].astype(jnp.float32)                     # (1, C)
    b2 = params["b2"][:, :T].astype(jnp.float32)              # (1, T)
    bp = params["bp"].astype(jnp.float32)                     # (1, C)

    kernel = functools.partial(_synth_attn_kernel, n_head=n_head)
    full = lambda shape: pl.BlockSpec(shape, lambda b: (0,) * len(shape))

    return pl.pallas_call(
        kernel,
        out_shape=jax.ShapeDtypeStruct((B, T, C), x.dtype),
        grid=(B,),
        in_specs=[
            pl.BlockSpec((None, T, C), lambda b: (b, 0, 0)),   # x, one batch element
            full((C, C)), full((1, C)),                        # w1, b1
            full((C, C)), full((1, C)),                        # value
            full((dk, T)), full((1, T)),                       # w2[:, :T], b2[:, :T]
            full((n_head, dk, C)), full((1, C)),               # proj (head-major), bp
        ],
        out_specs=pl.BlockSpec((None, T, C), lambda b: (b, 0, 0)),
        compiler_params=pltpu.CompilerParams(
            dimension_semantics=("parallel",),
            vmem_limit_bytes=48 * 1024 * 1024,
        ),
    )(xb, w1, b1, wv, bv, w2, b2, wp, bp)


def _reference(x, params, n_head):
    """Pure-JAX f32 mirror of the PyTorch forward (eval mode)."""
    B, T, C = x.shape
    dk = C // n_head
    h1 = jax.nn.relu(x @ params["w1"] + params["b1"][0])
    h1 = h1.reshape(B, T, n_head, dk).transpose(0, 2, 1, 3)            # (B, nh, T, dk)
    v = (x @ params["wv"] + params["bv"][0]).reshape(B, T, n_head, dk).transpose(0, 2, 1, 3)
    scores = h1 @ params["w2"] + params["b2"][0]                        # (B, nh, T, S)
    scores = scores[:, :, :T, :T]
    mask = jnp.tril(jnp.ones((T, T)))
    scores = jnp.where(mask == 0, -1e10, scores)
    p = jax.nn.softmax(scores, axis=-1)
    y = (p @ v).transpose(0, 2, 1, 3).reshape(B, T, C)
    return y @ params["wp"] + params["bp"][0]


if __name__ == "__main__":
    # Small shapes consistent with the module; C = 128 keeps the output lane-dense,
    # block_size > T + 1 exercises the w2[:, :T] slice path.
    B, T, C = 2, 8, 128
    n_head = 4
    block_size = 16
    dk, S = C // n_head, block_size - 1

    key = jax.random.PRNGKey(0)
    ks = jax.random.split(key, 10)
    scale = 0.1
    params = {
        "w1": scale * jax.random.normal(ks[0], (C, C), jnp.float32),
        "b1": scale * jax.random.normal(ks[1], (1, C), jnp.float32),
        "wv": scale * jax.random.normal(ks[2], (C, C), jnp.float32),
        "bv": scale * jax.random.normal(ks[3], (1, C), jnp.float32),
        # module init: w2 ~ U(-0.001, 0.001), b2 zeros (tiny random b2 here too)
        "w2": jax.random.uniform(ks[4], (dk, S), jnp.float32, -0.001, 0.001),
        "b2": 0.001 * jax.random.normal(ks[5], (1, S), jnp.float32),
        "wp": scale * jax.random.normal(ks[6], (C, C), jnp.float32),
        "bp": scale * jax.random.normal(ks[7], (1, C), jnp.float32),
    }
    x = jax.random.normal(ks[8], (B, T, C), jnp.float32)

    out = synthesizer_attention(x, params, n_head)
    out = jax.block_until_ready(out)

    ref = _reference(x, params, n_head)
    # Tolerance reflects bf16 matmul operands + approx reciprocal in the kernel
    # (reference is pure f32).
    np.testing.assert_allclose(np.asarray(out), np.asarray(ref), rtol=5e-2, atol=5e-2)
    print("KERNEL_OK")
</pallas_src>

<mosaic_0001>
module attributes {stable_mosaic.version = 11 : i64} {
  func.func @_synth_attn_kernel(%arg0: i32, %arg1: memref<1x8x128xbf16, #tpu.memory_space<vmem>>, %arg2: memref<128x128xbf16, #tpu.memory_space<vmem>>, %arg3: memref<1x128xf32, #tpu.memory_space<vmem>>, %arg4: memref<128x128xbf16, #tpu.memory_space<vmem>>, %arg5: memref<1x128xf32, #tpu.memory_space<vmem>>, %arg6: memref<32x8xbf16, #tpu.memory_space<vmem>>, %arg7: memref<1x8xf32, #tpu.memory_space<vmem>>, %arg8: memref<4x32x128xbf16, #tpu.memory_space<vmem>>, %arg9: memref<1x128xf32, #tpu.memory_space<vmem>>, %arg10: memref<1x8x128xf32, #tpu.memory_space<vmem>>) attributes {dimension_semantics = [#tpu.dimension_semantics<parallel>], iteration_bounds = array<i64: 2>, scalar_prefetch = 0 : i64, scratch_operands = 0 : i64, tpu.core_type = #tpu.core_type<tc>, window_params = [{transform_indices = @transform_0, window_bounds = array<i64: 1, 8, 128>}, {pipeline_mode = #tpu.pipeline_mode<synchronous>, transform_indices = @transform_1, window_bounds = array<i64: 128, 128>}, {pipeline_mode = #tpu.pipeline_mode<synchronous>, transform_indices = @transform_2, window_bounds = array<i64: 1, 128>}, {pipeline_mode = #tpu.pipeline_mode<synchronous>, transform_indices = @transform_3, window_bounds = array<i64: 128, 128>}, {pipeline_mode = #tpu.pipeline_mode<synchronous>, transform_indices = @transform_4, window_bounds = array<i64: 1, 128>}, {pipeline_mode = #tpu.pipeline_mode<synchronous>, transform_indices = @transform_5, window_bounds = array<i64: 32, 8>}, {pipeline_mode = #tpu.pipeline_mode<synchronous>, transform_indices = @transform_6, window_bounds = array<i64: 1, 8>}, {pipeline_mode = #tpu.pipeline_mode<synchronous>, transform_indices = @transform_7, window_bounds = array<i64: 4, 32, 128>}, {pipeline_mode = #tpu.pipeline_mode<synchronous>, transform_indices = @transform_8, window_bounds = array<i64: 1, 128>}, {transform_indices = @transform_9, window_bounds = array<i64: 1, 8, 128>}]} {
    %c0 = arith.constant 0 : index
    %c0_0 = arith.constant 0 : index
    %c0_1 = arith.constant 0 : index
    %0 = vector.load %arg1[%c0, %c0_0, %c0_1] : memref<1x8x128xbf16, #tpu.memory_space<vmem>>, vector<1x8x128xbf16>
    %1 = vector.shape_cast %0 : vector<1x8x128xbf16> to vector<8x128xbf16>
    %c0_2 = arith.constant 0 : index
    %c0_3 = arith.constant 0 : index
    %2 = vector.load %arg2[%c0_2, %c0_3] : memref<128x128xbf16, #tpu.memory_space<vmem>>, vector<128x128xbf16>
    %cst = arith.constant dense<0.000000e+00> : vector<8x128xf32>
    %3 = tpu.matmul %1, %2, %cst {dimension_numbers = #tpu.dot_dimension_numbers<[1], [0], [0], [1], [0, 0, 1, 1], [], []>} : vector<8x128xbf16>, vector<128x128xbf16>, vector<8x128xf32> -> vector<8x128xf32>
    %c0_4 = arith.constant 0 : index
    %c0_5 = arith.constant 0 : index
    %4 = vector.load %arg3[%c0_4, %c0_5] : memref<1x128xf32, #tpu.memory_space<vmem>>, vector<1x128xf32>
    %5 = vector.broadcast %4 : vector<1x128xf32> to vector<8x128xf32>
    %6 = arith.addf %3, %5 : vector<8x128xf32>
    %cst_6 = arith.constant 0.000000e+00 : f32
    %7 = vector.broadcast %cst_6 : f32 to vector<8x128xf32>
    %8 = arith.maximumf %6, %7 : vector<8x128xf32>
    %c0_7 = arith.constant 0 : index
    %c0_8 = arith.constant 0 : index
    %9 = vector.load %arg4[%c0_7, %c0_8] : memref<128x128xbf16, #tpu.memory_space<vmem>>, vector<128x128xbf16>
    %cst_9 = arith.constant dense<0.000000e+00> : vector<8x128xf32>
    %10 = tpu.matmul %1, %9, %cst_9 {dimension_numbers = #tpu.dot_dimension_numbers<[1], [0], [0], [1], [0, 0, 1, 1], [], []>} : vector<8x128xbf16>, vector<128x128xbf16>, vector<8x128xf32> -> vector<8x128xf32>
    %c0_10 = arith.constant 0 : index
    %c0_11 = arith.constant 0 : index
    %11 = vector.load %arg5[%c0_10, %c0_11] : memref<1x128xf32, #tpu.memory_space<vmem>>, vector<1x128xf32>
    %12 = vector.broadcast %11 : vector<1x128xf32> to vector<8x128xf32>
    %13 = arith.addf %10, %12 : vector<8x128xf32>
    %14 = arith.truncf %13 : vector<8x128xf32> to vector<8x128xbf16>
    %15 = vector.extract_strided_slice %8 {offsets = [0, 0], sizes = [8, 32], strides = [1, 1]} : vector<8x128xf32> to vector<8x32xf32>
    %16 = vector.extract_strided_slice %8 {offsets = [0, 32], sizes = [8, 32], strides = [1, 1]} : vector<8x128xf32> to vector<8x32xf32>
    %17 = vector.extract_strided_slice %8 {offsets = [0, 64], sizes = [8, 32], strides = [1, 1]} : vector<8x128xf32> to vector<8x32xf32>
    %18 = vector.extract_strided_slice %8 {offsets = [0, 96], sizes = [8, 32], strides = [1, 1]} : vector<8x128xf32> to vector<8x32xf32>
    %19 = tpu.concatenate %15, %16, %17, %18 in 0 : vector<8x32xf32>, vector<8x32xf32>, vector<8x32xf32>, vector<8x32xf32> -> vector<32x32xf32>
    %20 = arith.truncf %19 : vector<32x32xf32> to vector<32x32xbf16>
    %c0_12 = arith.constant 0 : index
    %c0_13 = arith.constant 0 : index
    %21 = vector.load %arg6[%c0_12, %c0_13] : memref<32x8xbf16, #tpu.memory_space<vmem>>, vector<32x8xbf16>
    %cst_14 = arith.constant dense<0.000000e+00> : vector<32x8xf32>
    %22 = tpu.matmul %20, %21, %cst_14 {dimension_numbers = #tpu.dot_dimension_numbers<[1], [0], [0], [1], [0, 0, 1, 1], [], []>} : vector<32x32xbf16>, vector<32x8xbf16>, vector<32x8xf32> -> vector<32x8xf32>
    %c0_15 = arith.constant 0 : index
    %c0_16 = arith.constant 0 : index
    %23 = vector.load %arg7[%c0_15, %c0_16] : memref<1x8xf32, #tpu.memory_space<vmem>>, vector<1x8xf32>
    %24 = vector.broadcast %23 : vector<1x8xf32> to vector<32x8xf32>
    %25 = arith.addf %22, %24 : vector<32x8xf32>
    %26 = tpu.iota {dimensions = array<i32: 0>} : vector<32x8xi32>
    %c8_i32 = arith.constant 8 : i32
    %c0_i32 = arith.constant 0 : i32
    %27 = arith.cmpi eq, %c8_i32, %c0_i32 : i32
    %c1_i32 = arith.constant 1 : i32
    %28 = arith.select %27, %c1_i32, %c8_i32 : i32
    %29 = vector.broadcast %28 : i32 to vector<32x8xi32>
    %30 = arith.remsi %26, %29 : vector<32x8xi32>
    %c0_i32_17 = arith.constant 0 : i32
    %31 = vector.broadcast %c0_i32_17 : i32 to vector<32x8xi32>
    %32 = arith.cmpi ne, %30, %31 : vector<32x8xi32>
    %c0_i32_18 = arith.constant 0 : i32
    %33 = vector.broadcast %c0_i32_18 : i32 to vector<32x8xi32>
    %34 = arith.cmpi slt, %30, %33 : vector<32x8xi32>
    %c0_i32_19 = arith.constant 0 : i32
    %35 = arith.cmpi slt, %28, %c0_i32_19 : i32
    %36 = vector.broadcast %35 : i1 to vector<32x8xi1>
    %37 = vector.broadcast %36 : vector<32x8xi1> to vector<32x8xi1>
    %38 = arith.xori %34, %37 : vector<32x8xi1>
    %39 = arith.andi %38, %32 : vector<32x8xi1>
    %40 = vector.broadcast %28 : i32 to vector<32x8xi32>
    %41 = arith.addi %30, %40 : vector<32x8xi32>
    %42 = arith.select %39, %41, %30 : vector<32x8xi1>, vector<32x8xi32>
    %43 = tpu.iota {dimensions = array<i32: 1>} : vector<32x8xi32>
    %44 = arith.cmpi sle, %43, %42 : vector<32x8xi32>
    %cst_20 = arith.constant -1.000000e+10 : f32
    %45 = vector.broadcast %cst_20 : f32 to vector<32x8xf32>
    %46 = arith.select %44, %25, %45 : vector<32x8xi1>, vector<32x8xf32>
    %cst_21 = arith.constant dense<0xFF800000> : vector<32xf32>
    %47 = vector.multi_reduction <maximumf>, %46, %cst_21 [1] : vector<32x8xf32> to vector<32xf32>
    %48 = vector.shape_cast %47 : vector<32xf32> to vector<32x1xf32>
    %49 = vector.broadcast %48 : vector<32x1xf32> to vector<32x8xf32>
    %50 = arith.subf %46, %49 : vector<32x8xf32>
    %51 = math.exp %50 : vector<32x8xf32>
    %cst_22 = arith.constant dense<0.000000e+00> : vector<32xf32>
    %52 = vector.multi_reduction <add>, %51, %cst_22 [1] : vector<32x8xf32> to vector<32xf32>
    %53 = vector.shape_cast %52 : vector<32xf32> to vector<32x1xf32>
    %54 = tpu.reciprocal %53 {approx = true} : vector<32x1xf32> -> vector<32x1xf32>
    %55 = vector.broadcast %54 : vector<32x1xf32> to vector<32x8xf32>
    %56 = arith.mulf %51, %55 : vector<32x8xf32>
    %57 = arith.truncf %56 : vector<32x8xf32> to vector<32x8xbf16>
    %cst_23 = arith.constant 0.000000e+00 : f32
    %58 = vector.broadcast %cst_23 : f32 to vector<8x128xf32>
    %59 = vector.extract_strided_slice %57 {offsets = [0, 0], sizes = [8, 8], strides = [1, 1]} : vector<32x8xbf16> to vector<8x8xbf16>
    %60 = vector.extract_strided_slice %14 {offsets = [0, 0], sizes = [8, 32], strides = [1, 1]} : vector<8x128xbf16> to vector<8x32xbf16>
    %cst_24 = arith.constant dense<0.000000e+00> : vector<8x32xf32>
    %61 = tpu.matmul %59, %60, %cst_24 {dimension_numbers = #tpu.dot_dimension_numbers<[1], [0], [0], [1], [0, 0, 1, 1], [], []>} : vector<8x8xbf16>, vector<8x32xbf16>, vector<8x32xf32> -> vector<8x32xf32>
    %62 = arith.truncf %61 : vector<8x32xf32> to vector<8x32xbf16>
    %c0_25 = arith.constant 0 : index
    %c0_26 = arith.constant 0 : index
    %c0_27 = arith.constant 0 : index
    %63 = vector.load %arg8[%c0_25, %c0_26, %c0_27] : memref<4x32x128xbf16, #tpu.memory_space<vmem>>, vector<1x32x128xbf16>
    %64 = vector.shape_cast %63 : vector<1x32x128xbf16> to vector<32x128xbf16>
    %cst_28 = arith.constant dense<0.000000e+00> : vector<8x128xf32>
    %65 = tpu.matmul %62, %64, %cst_28 {dimension_numbers = #tpu.dot_dimension_numbers<[1], [0], [0], [1], [0, 0, 1, 1], [], []>} : vector<8x32xbf16>, vector<32x128xbf16>, vector<8x128xf32> -> vector<8x128xf32>
    %66 = arith.addf %58, %65 : vector<8x128xf32>
    %67 = vector.extract_strided_slice %57 {offsets = [8, 0], sizes = [8, 8], strides = [1, 1]} : vector<32x8xbf16> to vector<8x8xbf16>
    %68 = vector.extract_strided_slice %14 {offsets = [0, 32], sizes = [8, 32], strides = [1, 1]} : vector<8x128xbf16> to vector<8x32xbf16>
    %cst_29 = arith.constant dense<0.000000e+00> : vector<8x32xf32>
    %69 = tpu.matmul %67, %68, %cst_29 {dimension_numbers = #tpu.dot_dimension_numbers<[1], [0], [0], [1], [0, 0, 1, 1], [], []>} : vector<8x8xbf16>, vector<8x32xbf16>, vector<8x32xf32> -> vector<8x32xf32>
    %70 = arith.truncf %69 : vector<8x32xf32> to vector<8x32xbf16>
    %c1 = arith.constant 1 : index
    %c0_30 = arith.constant 0 : index
    %c0_31 = arith.constant 0 : index
    %71 = vector.load %arg8[%c1, %c0_30, %c0_31] : memref<4x32x128xbf16, #tpu.memory_space<vmem>>, vector<1x32x128xbf16>
    %72 = vector.shape_cast %71 : vector<1x32x128xbf16> to vector<32x128xbf16>
    %cst_32 = arith.constant dense<0.000000e+00> : vector<8x128xf32>
    %73 = tpu.matmul %70, %72, %cst_32 {dimension_numbers = #tpu.dot_dimension_numbers<[1], [0], [0], [1], [0, 0, 1, 1], [], []>} : vector<8x32xbf16>, vector<32x128xbf16>, vector<8x128xf32> -> vector<8x128xf32>
    %74 = arith.addf %66, %73 : vector<8x128xf32>
    %75 = vector.extract_strided_slice %57 {offsets = [16, 0], sizes = [8, 8], strides = [1, 1]} : vector<32x8xbf16> to vector<8x8xbf16>
    %76 = vector.extract_strided_slice %14 {offsets = [0, 64], sizes = [8, 32], strides = [1, 1]} : vector<8x128xbf16> to vector<8x32xbf16>
    %cst_33 = arith.constant dense<0.000000e+00> : vector<8x32xf32>
    %77 = tpu.matmul %75, %76, %cst_33 {dimension_numbers = #tpu.dot_dimension_numbers<[1], [0], [0], [1], [0, 0, 1, 1], [], []>} : vector<8x8xbf16>, vector<8x32xbf16>, vector<8x32xf32> -> vector<8x32xf32>
    %78 = arith.truncf %77 : vector<8x32xf32> to vector<8x32xbf16>
    %c2 = arith.constant 2 : index
    %c0_34 = arith.constant 0 : index
    %c0_35 = arith.constant 0 : index
    %79 = vector.load %arg8[%c2, %c0_34, %c0_35] : memref<4x32x128xbf16, #tpu.memory_space<vmem>>, vector<1x32x128xbf16>
    %80 = vector.shape_cast %79 : vector<1x32x128xbf16> to vector<32x128xbf16>
    %cst_36 = arith.constant dense<0.000000e+00> : vector<8x128xf32>
    %81 = tpu.matmul %78, %80, %cst_36 {dimension_numbers = #tpu.dot_dimension_numbers<[1], [0], [0], [1], [0, 0, 1, 1], [], []>} : vector<8x32xbf16>, vector<32x128xbf16>, vector<8x128xf32> -> vector<8x128xf32>
    %82 = arith.addf %74, %81 : vector<8x128xf32>
    %83 = vector.extract_strided_slice %57 {offsets = [24, 0], sizes = [8, 8], strides = [1, 1]} : vector<32x8xbf16> to vector<8x8xbf16>
    %84 = vector.extract_strided_slice %14 {offsets = [0, 96], sizes = [8, 32], strides = [1, 1]} : vector<8x128xbf16> to vector<8x32xbf16>
    %cst_37 = arith.constant dense<0.000000e+00> : vector<8x32xf32>
    %85 = tpu.matmul %83, %84, %cst_37 {dimension_numbers = #tpu.dot_dimension_numbers<[1], [0], [0], [1], [0, 0, 1, 1], [], []>} : vector<8x8xbf16>, vector<8x32xbf16>, vector<8x32xf32> -> vector<8x32xf32>
    %86 = arith.truncf %85 : vector<8x32xf32> to vector<8x32xbf16>
    %c3 = arith.constant 3 : index
    %c0_38 = arith.constant 0 : index
    %c0_39 = arith.constant 0 : index
    %87 = vector.load %arg8[%c3, %c0_38, %c0_39] : memref<4x32x128xbf16, #tpu.memory_space<vmem>>, vector<1x32x128xbf16>
    %88 = vector.shape_cast %87 : vector<1x32x128xbf16> to vector<32x128xbf16>
    %cst_40 = arith.constant dense<0.000000e+00> : vector<8x128xf32>
    %89 = tpu.matmul %86, %88, %cst_40 {dimension_numbers = #tpu.dot_dimension_numbers<[1], [0], [0], [1], [0, 0, 1, 1], [], []>} : vector<8x32xbf16>, vector<32x128xbf16>, vector<8x128xf32> -> vector<8x128xf32>
    %90 = arith.addf %82, %89 : vector<8x128xf32>
    %c0_41 = arith.constant 0 : index
    %c0_42 = arith.constant 0 : index
    %91 = vector.load %arg9[%c0_41, %c0_42] : memref<1x128xf32, #tpu.memory_space<vmem>>, vector<1x128xf32>
    %92 = vector.broadcast %91 : vector<1x128xf32> to vector<8x128xf32>
    %93 = arith.addf %90, %92 : vector<8x128xf32>
    %c0_43 = arith.constant 0 : index
    %c0_44 = arith.constant 0 : index
    %c0_45 = arith.constant 0 : index
    %94 = vector.load %arg10[%c0_43, %c0_44, %c0_45] : memref<1x8x128xf32, #tpu.memory_space<vmem>>, vector<1x8x128xf32>
    %95 = vector.shape_cast %94 : vector<1x8x128xf32> to vector<8x128xf32>
    %96 = vector.shape_cast %93 : vector<8x128xf32> to vector<1x8x128xf32>
    tpu.vector_store %arg10[%c0_43, %c0_44, %c0_45], %96 {strides = array<i32>} : memref<1x8x128xf32, #tpu.memory_space<vmem>>, vector<1x8x128xf32>,
    return
  }
  func.func @transform_0(%arg0: i32) -> (i32, i32, i32) {
    %c0_i32 = arith.constant 0 : i32
    %c0_i32_0 = arith.constant 0 : i32
    %c0_i32_1 = arith.constant 0 : i32
    return %arg0, %c0_i32, %c0_i32_0 : i32, i32, i32
  }
  func.func @transform_1(%arg0: i32) -> (i32, i32) {
    %c0_i32 = arith.constant 0 : i32
    %c0_i32_0 = arith.constant 0 : i32
    %c0_i32_1 = arith.constant 0 : i32
    return %c0_i32, %c0_i32_0 : i32, i32
  }
  func.func @transform_2(%arg0: i32) -> (i32, i32) {
    %c0_i32 = arith.constant 0 : i32
    %c0_i32_0 = arith.constant 0 : i32
    %c0_i32_1 = arith.constant 0 : i32
    return %c0_i32, %c0_i32_0 : i32, i32
  }
  func.func @transform_3(%arg0: i32) -> (i32, i32) {
    %c0_i32 = arith.constant 0 : i32
    %c0_i32_0 = arith.constant 0 : i32
    %c0_i32_1 = arith.constant 0 : i32
    return %c0_i32, %c0_i32_0 : i32, i32
  }
  func.func @transform_4(%arg0: i32) -> (i32, i32) {
    %c0_i32 = arith.constant 0 : i32
    %c0_i32_0 = arith.constant 0 : i32
    %c0_i32_1 = arith.constant 0 : i32
    return %c0_i32, %c0_i32_0 : i32, i32
  }
  func.func @transform_5(%arg0: i32) -> (i32, i32) {
    %c0_i32 = arith.constant 0 : i32
    %c0_i32_0 = arith.constant 0 : i32
    %c0_i32_1 = arith.constant 0 : i32
    return %c0_i32, %c0_i32_0 : i32, i32
  }
  func.func @transform_6(%arg0: i32) -> (i32, i32) {
    %c0_i32 = arith.constant 0 : i32
    %c0_i32_0 = arith.constant 0 : i32
    %c0_i32_1 = arith.constant 0 : i32
    return %c0_i32, %c0_i32_0 : i32, i32
  }
  func.func @transform_7(%arg0: i32) -> (i32, i32, i32) {
    %c0_i32 = arith.constant 0 : i32
    %c0_i32_0 = arith.constant 0 : i32
    %c0_i32_1 = arith.constant 0 : i32
    %c0_i32_2 = arith.constant 0 : i32
    return %c0_i32, %c0_i32_0, %c0_i32_1 : i32, i32, i32
  }
  func.func @transform_8(%arg0: i32) -> (i32, i32) {
    %c0_i32 = arith.constant 0 : i32
    %c0_i32_0 = arith.constant 0 : i32
    %c0_i32_1 = arith.constant 0 : i32
    return %c0_i32, %c0_i32_0 : i32, i32
  }
  func.func @transform_9(%arg0: i32) -> (i32, i32, i32) {
    %c0_i32 = arith.constant 0 : i32
    %c0_i32_0 = arith.constant 0 : i32
    %c0_i32_1 = arith.constant 0 : i32
    return %arg0, %c0_i32, %c0_i32_0 : i32, i32, i32
  }
}

</mosaic_0001>

<bundles_post_ra>
// kernel: tpu_custom_call.1
= control target key start
LH: loop header
LB: loop body
LE: loop exit
PB: predicated region body
PF: predicated region fallthrough
CT: control target
= control target key end

     0   :  { %s1695_s0 = inlined_call_operand.vmem [shape: bf16[2,8,128], index: 0, kind: input, shape index: {}]   ;;  %s1696_s1 = inlined_call_operand.hbm [shape: bf16[128,128], index: 1, kind: input, shape index: {}]   ;;  %s1697_s2 = inlined_call_operand.vmem [shape: f32[1,128], index: 2, kind: input, shape index: {}]   ;;  %s1698_s3 = inlined_call_operand.hbm [shape: bf16[128,128], index: 3, kind: input, shape index: {}]   ;;  %s1699_s4 = inlined_call_operand.vmem [shape: f32[1,128], index: 4, kind: input, shape index: {}]   ;;  %s1700_s5 = inlined_call_operand.vmem [shape: bf16[32,8], index: 5, kind: input, shape index: {}]   ;;  %s1701_s6 = inlined_call_operand.vmem [shape: f32[1,8], index: 6, kind: input, shape index: {}]   ;;  %s1702_s7 = inlined_call_operand.hbm [shape: bf16[4,32,128], index: 7, kind: input, shape index: {}]   ;;  %s1703_s8 = inlined_call_operand.vmem [shape: f32[1,128], index: 8, kind: input, shape index: {}]   ;;  %s1704_s9 = inlined_call_operand.hbm [shape: f32[2,8,128], index: 9, kind: output, shape index: {}]  }
   0x1   :  { %1705 = sst [smem:[#allocation13_spill]] %s1696_s1 }
   0x2   :  { %1706 = sst [smem:[#allocation14_spill]] %s1698_s3 }
   0x3   :  { %14 = vsyncpa [#allocation3], 0 }
   0x4   :  { %15 = vsyncpa [#allocation6], 0 }
   0x5   :  { %16 = vsyncpa [#allocation4], 0 }
   0x6   :  { %18 = vsyncpa [#allocation4 + $0x1], 0  ;;  %s1520_s30 = smov 0   ;;  %s1522_s10 = smov 0  }
   0x7   :  { %s1524_s11 = smov 0   ;;  %s1526_s12 = smov 0  }
   0x8 LB: > { %s1541_s13 = sadd.s32 4294967295, %s1460_s12   ;;  %s1049_s14 = sadd.s32 4294967294, %s1460_s12   ;;  %s1460_s12 = sphi %s1526_s12, %s1720_s12   ;;  %s1456_s11 = sphi %s1524_s11, %s1719_s11   ;;  %s1452_s10 = sphi %s1522_s10, %s1718_s10   ;;  %s1448_s30 = sphi %s1520_s30, %s1717_s30  }
   0x9   : > { %s1545_s15 = sadd.s32 1, %s1460_s12   ;;  %s225_s16 = sadd.s32 1, %s1456_s11 }
   0xa   : > { %s222_s17 = ssub.s32 %s1460_s12, %s1545_s15  ;;  %p235_p0 = scmp.ne.s32.totalorder %s1456_s11, %s1452_s10 }
   0xb   : > { %p223_p1 = scmp.eq.s32.totalorder %s222_s17, 0  ;;  %p236_p2 = scmp.eq.s32.totalorder %s1541_s13, 1 }
   0xc   : > { %p241_p3 = scmp.ne.s32.totalorder %s1452_s10, %s1448_s30  ;;  %p242_p4 = scmp.eq.s32.totalorder %s1049_s14, 1 }
   0xd   : > { %s1556_s18 = scalar_select %p223_p1, %s1456_s11, %s225_s16  }
   0xe   : > { %p1558_p5 = por %p236_p2, %p235_p0  ;;  %p1562_p6 = por %p242_p4, %p241_p3 }
   0xf   : > { %1707 = sst [smem:[#allocation12_spill]] %s1556_s18  ;;  %p1050_p7 = scmp.ge.s32.totalorder %s1460_s12, 1 }
  0x10   : > { %p249_p8 = scmp.lt.s32.totalorder %s1460_s12, 3  ;;  %p1233_p9 = scmp.eq.s32.totalorder %s1541_s13, 0 }
  0x11   : > { %s1711_s3 = sld [smem:[#allocation14_spill]]  ;;  %s1462_s29 = smov [#allocation5]  }
  0x12   : > { %p1569_p10 = pnand %p1050_p7, %p249_p8  ;;  %s1712_s1 = sld [smem:[#allocation13_spill]] }
  0x13   : > { %s279_s14 = sshll.u32 %s1462_s29, 4  ;;  %s1463_s16 = smov 64   ;;  %s280_s14 = int_to_ptr.vmem [resolvable:$true] %s279_s14 }
  0x14   : > { %p1219_p11 = pneg %p1569_p10  ;;  %s1464_s17 = smov 4  }
  0x15   : > { %s1465_s22 = smov [#allocation2]  }
  0x16   : > { %p1583_p12 = pnand %p1233_p9, %p1219_p11  ;;  %s262_s23 = sshll.u32 %s1465_s22, 4  ;;  %s263_s23 = int_to_ptr.vmem [resolvable:$true] %s262_s23 }
  0x17   : > { %s277_s24 = sshll.u32 %s1711_s3, 4  ;;  %s1466_s3 = smov [#allocation7]   ;;  %s278_s24 = int_to_ptr.hbm [resolvable:$true] %s277_s24 }
  0x18   : > { %s260_s27 = sshll.u32 %s1712_s1, 4  ;;  %s300_s1 = sshll.u32 %s1702_s7, 4  ;;  %s261_s27 = int_to_ptr.hbm [resolvable:$true] %s260_s27  ;;  %s301_s1 = int_to_ptr.hbm [resolvable:$true] %s300_s1 }
  0x19   : > { %1225 = dma.hbm_to_vmem [thread:$0]  (!%p1583_p12), %s278_s24, 1024, %s280_s14, [#allocation6], %s1463_s16, %s1463_s16, %s1464_s17  }
  0x1a   : > { %1222 = dma.hbm_to_vmem [thread:$0]  (!%p1583_p12), %s261_s27, 1024, %s263_s23, [#allocation3], %s1463_s16, %s1463_s16, %s1464_s17  }
  0x1b   : > { %s302_s18 = sshll.u32 %s1466_s3, 4  ;;  %328 = sbr.rel (%p1569_p10) target bundleno = 1174 (0x496), region = 56  ;;  %s303_s18 = int_to_ptr.vmem [resolvable:$true] %s302_s18 }
  0x1c   : > { %1228 = dma.hbm_to_vmem [thread:$0]  (!%p1583_p12), %s301_s1, 1024, %s303_s18, [#allocation6], %s1463_s16, %s1463_s16, %s1464_s17  }
  0x20   : > { %1435 = dma.done.wait (%p1233_p9), [#allocation3], 1024  }
  0x21   : > { %1437 = vsyncadd (%p1233_p9), [#allocation3], 4294966272 }
  0x22   : > { %1439 = dma.done.wait (%p1233_p9), [#allocation6], 2048  }
  0x23   : > { %1441 = vsyncadd (%p1233_p9), [#allocation6], 4294965248  ;;  %v1186_v0 = vld [vmem:[#allocation2 + $0x38] sm:$0xff]  ;;  %v1185_v1 = vld [vmem:[#allocation2 + $0x30] sm:$0xff]  ;;  %p374_p13 = scmp.lt.s32.totalorder %s1541_s13, 1  ;;  %s1467_s22 = smov 32   ;;  %v602_v29 = vlaneseq }
  0x24   : > { %448 = vmatpush.bf16.msra.mxu0 %v1186_v0  ;;  %v1184_v2 = vld [vmem:[#allocation2 + $0x28] sm:$0xff]  ;;  %v1183_v3 = vld [vmem:[#allocation2 + $0x20] sm:$0xff]  ;;  %v1182_v4 = vld [vmem:[#allocation2 + $0x18] sm:$0xff]  ;;  %s1468_s23 = smov 96   ;;  %s1469_s25 = smov 64   ;;  %vm576_vm0 = vcmask 261120  }
  0x25   : > { %v1181_v5 = vld [vmem:[#allocation2 + $0x10] sm:$0xff]  ;;  %s375_s1 = scalar_select %p374_p13, %s1541_s13, 1  ;;  %v1180_v6 = vld [vmem:[#allocation2 + $0x8] sm:$0xff]  ;;  %v1179_v7 = vld [vmem:[#allocation2] sm:$0xff]  ;;  %v603_v30 = vshrl.u32 %v602_v29, 7  ;;  %v656_v32 = vand.u32 127, %v602_v29 }
  0x26   : > { %v1196_v9 = vld [vmem:[%s1700_s5 + $0x8] sm:$0xff]  ;;  %v1195_v10 = vld [vmem:[%s1700_s5] sm:$0xff]  ;;  %v1194_v16 = vld [vmem:[#allocation5 + $0x38] sm:$0xff]  ;;  %vm665_vm3 = vcmask 64512   ;;  %vm717_vm6 = vcmask 1043456   ;;  %s371_s21 = sand.u32 1, %s1452_s10  }
  0x27   : > { %s1060_s3 = sshll.u32 %s375_s1, 2  ;;  %589 = vmatpush.bf16.msra.mxu2 %v1196_v9  ;;  %v1280_v11 = vld [vmem:[%s1697_s2] ss:$0 sm:$0xff]  ;;  %530 = vmatpush.bf16.msra.mxu1 %v1194_v16  ;;  %v1193_v17 = vld [vmem:[#allocation5 + $0x30] sm:$0xff]  ;;  %v1192_v18 = vld [vmem:[#allocation5 + $0x28] sm:$0xff]  ;;  %v606_v31 = vadd.s32 24, %v603_v30 }
  0x28   : > { %449 = vmatpush.bf16.msra.mxu0 %v1185_v1  ;;  %s377_s24 = scalar_lea.vmem %s1695_s0, %s1060_s3  ;;  %v1191_v19 = vld [vmem:[#allocation5 + $0x20] sm:$0xff]  ;;  %v1190_v22 = vld [vmem:[#allocation5 + $0x18] sm:$0xff]  ;;  %v1189_v26 = vld [vmem:[#allocation5 + $0x10] sm:$0xff]  ;;  %v611_v35 = vand.u32 7, %v603_v30  ;;  %v604_v38 = vadd.s32 8, %v603_v30  ;;  %v605_v44 = vadd.s32 16, %v603_v30 }
  0x29   : > { %v379_v8 = vld [vmem:[%s377_s24] sm:$0xf]  ;;  %v1188_v27 = vld [vmem:[#allocation5 + $0x8] sm:$0xff]  ;;  %v632_v33 = vand.u32 7, %v606_v31  ;;  %s1059_s24 = sshll.u32 %s371_s21, 3  ;;  %s1176_s27 = sshll.u32 %s1541_s13, 3 }
  0x2a   : > { %v1187_v28 = vld [vmem:[#allocation5] sm:$0xff]  ;;  %vm657_vm2 = vcmp.le.s32.totalorder %v656_v32, %v611_v35  ;;  %v618_v42 = vand.u32 7, %v604_v38  ;;  %v625_v48 = vand.u32 7, %v605_v44  ;;  %s954_s14 = scalar_lea.hbm %s1704_s9, %s1176_s27  ;;  %s944_s13 = scalar_lea.sflag [#allocation4], %s371_s21 }
  0x2b   : > { %590 = vmatpush.bf16.msra.mxu2 %v1195_v10  ;;  %531 = vmatpush.bf16.msra.mxu1 %v1193_v17  ;;  %vm1625_vm1 = vcmp.le.s32.totalorder %v656_v32, %v632_v33  ;;  %v1281_v36 = vld [vmem:[%s1701_s6] ss:$0 sm:$0xff] }
  0x2c   : > { %450 = vmatpush.bf16.msra.mxu0 %v1184_v2  ;;  %vm658_vm4 = vcmp.le.s32.totalorder %v656_v32, %v618_v42  ;;  %vm659_vm5 = vcmp.le.s32.totalorder %v656_v32, %v625_v48  ;;  %v1282_v57 = vld [vmem:[%s1699_s4] ss:$0 sm:$0xff]  ;;  %v1198_v32 = vld [vmem:[#allocation7 + $0x8] sm:$0xff] }
  0x2f   : > { %532 = vmatpush.bf16.msra.mxu1 %v1192_v18  ;;  %818 = vmatpush.bf16.msrb.mxu2 %v1198_v32 }
  0x30   : > { %451 = vmatpush.bf16.msra.mxu0 %v1183_v3 }
  0x33   : > { %533 = vmatpush.bf16.msra.mxu1 %v1191_v19 }
  0x34   : > { %452 = vmatpush.bf16.msra.mxu0 %v1182_v4 }
  0x37   : > { %534 = vmatpush.bf16.msra.mxu1 %v1190_v22 }
  0x38   : > { %453 = vmatpush.bf16.msra.mxu0 %v1181_v5 }
  0x3b   : > { %535 = vmatpush.bf16.msra.mxu1 %v1189_v26 }
  0x3c   : > { %454 = vmatpush.bf16.msra.mxu0 %v1180_v6 }
  0x3f   : > { %536 = vmatpush.bf16.msra.mxu1 %v1188_v27 }
  0x40   : > { %455 = vmatpush.bf16.msra.mxu0 %v1179_v7 }
  0x43   : > { %456 = vmatmul.bf16.vlgmr.msra.gmra.mxu0 %v379_v8  ;;  %537 = vmatpush.bf16.msra.mxu1 %v1187_v28 }
  0x46   : > { %538 = vmatmul.bf16.vlgmr.msra.gmra.mxu1 %v379_v8 }
  0xc0   : > { %v457_v12 = vpop.f32.mrf.mxu0 }
  0xc1   : > { %v458_v13 = vadd.f32 %v1280_v11, %v457_v12 }
  0xc3   : > { %v461_v14 = vmax.f32 %v458_v13, 0.0  ;;  %v539_v56 = vpop.f32.mrf.mxu1 }
  0xc4   : > { %v540_v58 = vadd.f32 %v1282_v57, %v539_v56 }
  0xc5   : > { %551 = vrot.lane.b32.xlu1 %v461_v14, %s1467_s22  ;;  %545 = vrot.lane.b32.xlu0 %v461_v14, %s1468_s23 }
  0xc6   : > { %v543_v59 = vpack.c.bf16 %v540_v58, %v540_v58 }
  0xc8   : > { %v459_v15 = vpop.f32.mrf.mxu0  ;;  %v740_v60 = vunpack.c.l.b16 %v543_v59  ;;  %v719_v63 = vsel %vm717_vm6, %v543_v59, 0  ;;  %v1203_v59 = vld [vmem:[#allocation7 + $0x30] sm:$0xff] }
  0xc9   : > { %728 = vmatpush.bf16.msra.mxu3 %v719_v63 }
  0xca   : > { %v741_v62 = vpack.c.b16 %v740_v60, %v740_v60  ;;  %v1202_v60 = vld [vmem:[#allocation7 + $0x28] sm:$0xff] }
  0xcb   : > { %v541_v61 = vpop.f32.mrf.mxu1  ;;  %873 = vmatpush.bf16.msrb.mxu1 %v1202_v60 }
  0xcc   : > { %v1201_v61 = vld [vmem:[#allocation7 + $0x20] sm:$0xff] }
  0xcd   : > { %548 = vrot.lane.b32.xlu0 %v461_v14, %s1469_s25 }
  0xcf   : > { %874 = vmatpush.bf16.msrb.mxu1 %v1201_v61 }
 0x137   : > { %v546_v20 = vpop.permute.xlu0 %545  ;;  %v552_v24 = vpop.permute.xlu1 %551 }
 0x138   : > { %v554_v21 = vpack.c.bf16 %v546_v20, %v461_v14 }
 0x13a   : > { %1133 = vmatmul.msk.bf16.vlgmr.msra.gmra.mxu2 %vm576_vm0, %v554_v21  ;;  %v1200_v21 = vld [vmem:[#allocation7 + $0x18] sm:$0xff] }
 0x13f   : > { %v549_v23 = vpop.permute.xlu0 %548 }
 0x140   : > { %v555_v25 = vpack.c.bf16 %v552_v24, %v549_v23  ;;  %v1199_v24 = vld [vmem:[#allocation7 + $0x10] sm:$0xff] }
 0x14a   : > { %1134 = vmatmul.msk.bf16.gmra.mxu2 %vm576_vm0, %v555_v25 }
 0x1bd   : > { %v592_v37 = vpop.f32.mrf.mxu2 }
 0x1be   : > { %v593_v39 = vadd.f32 %v1281_v36, %v592_v37 }
 0x1c0   : > { %v661_v40 = vsel %vm657_vm2, %v593_v39, -1e+10 }
 0x1c1   : > { %v666_v41 = vsel %vm665_vm3, %v661_v40, -inf }
 0x1c2   : > { %667 = vmax.xlane.f32.xlu1 %v666_v41 }
 0x1c5   : > { %v594_v43 = vpop.f32.mrf.mxu2 }
 0x1c6   : > { %v595_v45 = vadd.f32 %v1281_v36, %v594_v43 }
 0x1c8   : > { %v662_v46 = vsel %vm658_vm4, %v595_v45, -1e+10 }
 0x1c9   : > { %v669_v47 = vsel %vm665_vm3, %v662_v46, -inf }
 0x1ca   : > { %670 = vmax.xlane.f32.xlu2 %v669_v47 }
 0x1cd   : > { %v597_v49 = vpop.f32.mrf.mxu2 }
 0x1ce   : > { %v598_v50 = vadd.f32 %v1281_v36, %v597_v49 }
 0x1d0   : > { %v663_v51 = vsel %vm659_vm5, %v598_v50, -1e+10 }
 0x1d1   : > { %v672_v52 = vsel %vm665_vm3, %v663_v51, -inf }
 0x1d2   : > { %673 = vmax.xlane.f32.xlu1 %v672_v52 }
 0x1d5   : > { %v599_v53 = vpop.f32.mrf.mxu2 }
 0x1d6   : > { %v600_v54 = vadd.f32 %v1281_v36, %v599_v53  ;;  %v1197_v36 = vld [vmem:[#allocation7] sm:$0xff]  ;;  %v1204_v53 = vld [vmem:[#allocation7 + $0x38] sm:$0xff] }
 0x1d7   : > { %819 = vmatpush.bf16.msrb.mxu2 %v1197_v36 }
 0x1d8   : > { %v664_v55 = vsel %vm1625_vm1, %v600_v54, -1e+10 }
 0x1d9   : > { %v675_v15 = vsel %vm665_vm3, %v664_v55, -inf }
 0x1db   : > { %929 = vmatpush.bf16.msra.mxu2 %v1204_v53 }
 0x1df   : > { %930 = vmatpush.bf16.msra.mxu2 %v1203_v59 }
 0x1eb   : > { %881 = vrot.lane.b32.xlu1 %v741_v62, %s1467_s22  ;;  %s373_s22 = scalar_lea.vmem [#allocation8], %s1059_s24  ;;  %s1410_s24 = scalar_lea.hbm %s1704_s9, 16 }
 0x235   : > { %v668_v0 = vpop.xlane.xlu1 %667 }
 0x236   : > { %v678_v1 = vsub.f32 %v661_v40, %v668_v0 }
 0x238   : > { %v682_v2 = vmul.f32 1.442695, %v678_v1 }
 0x23a   : > { %1284 = vpow2.f32 %v682_v2 }
 0x23d   : > { %v671_v3 = vpop.xlane.xlu2 %670 }
 0x23e   : > { %v679_v4 = vsub.f32 %v662_v46, %v671_v3 }
 0x240   : > { %v1285_v5 = vpop.eup %1284  ;;  %v684_v6 = vmul.f32 1.442695, %v679_v4 }
 0x241   : > { %v690_v7 = vsel %vm665_vm3, %v1285_v5, 0.0 }
 0x242   : > { %1286 = vpow2.f32 %v684_v6  ;;  %691 = vadd.xlane.f32.xlu2 %v690_v7  ;;  %v1283_v7 = vld [vmem:[%s1703_s8] ss:$0 sm:$0xff] }
 0x245   : > { %v674_v8 = vpop.xlane.xlu1 %673 }
 0x246   : > { %v680_v9 = vsub.f32 %v663_v51, %v674_v8 }
 0x248   : > { %v1287_v10 = vpop.eup %1286  ;;  %v686_v11 = vmul.f32 1.442695, %v680_v9 }
 0x249   : > { %v693_v12 = vsel %vm665_vm3, %v1287_v10, 0.0 }
 0x24a   : > { %1288 = vpow2.f32 %v686_v11  ;;  %694 = vadd.xlane.f32.xlu0 %v693_v12 }
 0x250   : > { %v1289_v13 = vpop.eup %1288 }
 0x251   : > { %v696_v14 = vsel %vm665_vm3, %v1289_v13, 0.0 }
 0x252   : > { %697 = vadd.xlane.f32.xlu0 %v696_v14 }
 0x25a   : > { %742 = vrot.lane.b32.xlu2 %v741_v62, %s1468_s23  ;;  %s956_s23 = sshll.u32 %s373_s22, 4  ;;  %s957_s23 = int_to_ptr.vmem [resolvable:$true] %s956_s23 }
 0x25d   : > { %v882_v27 = vpop.permute.xlu1 %881 }
 0x25e   : > { %v887_v29 = vsel %vm717_vm6, %v882_v27, 0 }
 0x283   : > { %676 = vmax.xlane.f32.xlu2 %v675_v15 }
 0x2b5   : > { %v692_v16 = vpop.xlane.xlu2 %691 }
 0x2b6   : > { %1290 = vrcp.f32 %v692_v16 }
 0x2bc   : > { %v1291_v17 = vpop.eup %1290 }
 0x2bd   : > { %v743_v18 = vpop.permute.xlu2 %742  ;;  %v706_v19 = vmul.f32 %v1291_v17, %v1285_v5  ;;  %v695_v22 = vpop.xlane.xlu0 %694 }
 0x2be   : > { %v748_v20 = vsel %vm717_vm6, %v743_v18, 0  ;;  %1292 = vrcp.f32 %v695_v22 }
 0x2bf   : > { %757 = vmatpush.bf16.msrb.mxu3 %v748_v20  ;;  %v710_v23 = vpack.c.bf16 %v706_v19, %v706_v19 }
 0x2c1   : > { %1135 = vmatmul.msk.bf16.vlgmr.msra.gmra.mxu3 %vm665_vm3, %v710_v23 }
 0x2c3   : > { %790 = vmatpush.bf16.msra.mxu3 %v1200_v21 }
 0x2c4   : > { %v1293_v25 = vpop.eup %1292 }
 0x2c5   : > { %v707_v26 = vmul.f32 %v1293_v25, %v1287_v10  ;;  %v698_v43 = vpop.xlane.xlu0 %697 }
 0x2c7   : > { %791 = vmatpush.bf16.msra.mxu3 %v1199_v24  ;;  %v711_v28 = vpack.c.bf16 %v707_v26, %v707_v26 }
 0x2d1   : > { %1136 = vmatmul.msk.bf16.vlgmr.msrb.gmra.mxu3 %vm665_vm3, %v711_v28 }
 0x2d2   : > { %896 = vmatpush.bf16.msrb.mxu3 %v887_v29 }
 0x2f6   : > { %v677_v30 = vpop.xlane.xlu2 %676 }
 0x2f7   : > { %v681_v31 = vsub.f32 %v664_v55, %v677_v30 }
 0x2f9   : > { %v688_v33 = vmul.f32 1.442695, %v681_v31 }
 0x2fb   : > { %1294 = vpow2.f32 %v688_v33 }
 0x301   : > { %v1295_v34 = vpop.eup %1294 }
 0x302   : > { %v699_v35 = vsel %vm665_vm3, %v1295_v34, 0.0 }
 0x303   : > { %700 = vadd.xlane.f32.xlu0 %v699_v35 }
 0x317   : > { %825 = vrot.lane.b32.xlu0 %v741_v62, %s1469_s25  ;;  %s958_s25 = sshll.u32 %s954_s14, 4  ;;  %s959_s25 = int_to_ptr.hbm [resolvable:$true] %s958_s25 }
 0x318   : > { %s1404_s26 = sshra.s32 %s959_s25, 4  ;;  %s1405_s26 = int_to_ptr.hbm [resolvable:$true] %s1404_s26 }
 0x319   : > { %s1406_s1 = scalar_lea.hbm %s1405_s26, 8  ;;  %p1411_p3 = scmp.lt.s32.totalorder %s1405_s26, %s1704_s9 }
 0x31a   : > { %p1407_p0 = scmp.ne.s32.totalorder %s1405_s26, %s1406_s1  ;;  %p1412_p4 = scmp.lt.s32.totalorder %s1410_s24, %s1406_s1 }
 0x31c   : > { %p1408_p1 = pnand %p1407_p0, %p1558_p5  ;;  %p1413_p7 = por %p1412_p4, %p1411_p3 }
 0x31e   : > { %p1409_p2 = pneg %p1408_p1 }
 0x320   : > { %p1414_p8 = pnand %p1413_p7, %p1409_p2 }
 0x344   : > { %v730_v37 = vpop.f32.mrf.mxu3 }
 0x345   : > { %v734_v38 = vpack.c.bf16 %v730_v37, %v730_v37 }
 0x347   : > { %1154 = vmatmul.msk.bf16.vlgmr.msrb.gmra.mxu2 %vm576_vm0, %v734_v38 }
 0x34c   : > { %v732_v39 = vpop.f32.mrf.mxu3 }
 0x354   : > { %v759_v40 = vpop.f32.mrf.mxu3 }
 0x355   : > { %v763_v41 = vpack.c.bf16 %v759_v40, %v759_v40 }
 0x357   : > { %1145 = vmatmul.msk.bf16.vlgmr.msra.gmra.mxu3 %vm576_vm0, %v763_v41 }
 0x35c   : > { %v761_v42 = vpop.f32.mrf.mxu3 }
 0x376   : > { %v701_v44 = vpop.xlane.xlu0 %700 }
 0x377   : > { %1296 = vrcp.f32 %v701_v44 }
 0x378   : > { %1298 = vrcp.f32 %v698_v43 }
 0x37d   : > { %v1297_v45 = vpop.eup %1296 }
 0x37e   : > { %v709_v46 = vmul.f32 %v1297_v45, %v1295_v34  ;;  %v1299_v48 = vpop.eup %1298 }
 0x37f   : > { %v708_v49 = vmul.f32 %v1299_v48, %v1289_v13 }
 0x380   : > { %v713_v47 = vpack.c.bf16 %v709_v46, %v709_v46 }
 0x381   : > { %v712_v52 = vpack.c.bf16 %v708_v49, %v708_v49 }
 0x382   : > { %1165 = vmatmul.msk.bf16.vlgmr.msrb.gmra.mxu3 %vm665_vm3, %v713_v47 }
 0x389   : > { %v826_v50 = vpop.permute.xlu0 %825 }
 0x38a   : > { %v831_v51 = vsel %vm717_vm6, %v826_v50, 0 }
 0x38b   : > { %840 = vmatpush.bf16.msrb.mxu0 %v831_v51 }
 0x38e   : > { %1155 = vmatmul.msk.bf16.vlgmr.msrb.gmra.mxu0 %vm665_vm3, %v712_v52 }
 0x3ca   : > { %v821_v54 = vpop.f32.mrf.mxu2 }
 0x3d2   : > { %v823_v55 = vpop.f32.mrf.mxu2 }
 0x3da   : > { %v793_v56 = vpop.f32.mrf.mxu3 }
 0x3db   : > { %v822_v57 = vadd.f32 %v821_v54, %v793_v56 }
 0x3e2   : > { %v795_v58 = vpop.f32.mrf.mxu3 }
 0x405   : > { %v898_v62 = vpop.f32.mrf.mxu3 }
 0x406   : > { %v902_v63 = vpack.c.bf16 %v898_v62, %v898_v62 }
 0x408   : > { %1174 = vmatmul.msk.bf16.vlgmr.msra.gmra.mxu2 %vm576_vm0, %v902_v63 }
 0x40b   : > { %v842_v0 = vpop.f32.mrf.mxu0 }
 0x40c   : > { %v846_v1 = vpack.c.bf16 %v842_v0, %v842_v0 }
 0x40d   : > { %v900_v2 = vpop.f32.mrf.mxu3 }
 0x40e   : > { %1164 = vmatmul.msk.bf16.vlgmr.msrb.gmra.mxu1 %vm576_vm0, %v846_v1 }
 0x413   : > { %v844_v3 = vpop.f32.mrf.mxu0 }
 0x48b   : > { %v876_v4 = vpop.f32.mrf.mxu1  ;;  %v932_v5 = vpop.f32.mrf.mxu2 }
 0x48c   : > { %v880_v6 = vadd.f32 %v876_v4, %v822_v57 }
 0x48e   : > { %v936_v8 = vadd.f32 %v932_v5, %v880_v6 }
 0x490   : > { %v941_v9 = vadd.f32 %v1283_v7, %v936_v8 }
 0x492   : > { %942 = vst [vmem:[%s373_s22] sm:$0xff] %v941_v9 }
 0x493   : > { %v878_v10 = vpop.f32.mrf.mxu1  ;;  %v934_v11 = vpop.f32.mrf.mxu2 }
 0x494   : > { %1417 = shalt.err (!%p1414_p8)
}
 0x495   : > { %1217 = dma.vmem_to_hbm [thread:$0]  (%p1558_p5), %s957_s23, 128, %s959_s25, %s944_s13  }
 0x496 PF: > { %p1239_p9 = scmp.ge.s32.totalorder %s1460_s12, 2  ;;  %s970_s21 = sand.u32 1, %s1448_s30  }
 0x497   : > { %s971_s29 = scalar_lea.sflag [#allocation4], %s970_s21 }
 0x498   : > { %p1230_p10 = pnand %p1239_p9, %p1562_p6 }
 0x49a   : > { %p1231_p11 = pneg %p1230_p10 }
 0x49c   : > { %1443 = dma.done.wait (%p1231_p11), %s971_s29, 128  }
 0x49d   : > { %1445 = vsyncadd (%p1231_p11), %s971_s29, 4294967168  ;;  %s1716_s14 = sld [smem:[#allocation12_spill]]  ;;  %p21_p12 = scmp.ge.s32.totalorder %s1545_s15, 4  }
 0x49e   : > { %s1717_s30 = smov %s1452_s10  ;;  %s1718_s10 = smov %s1456_s11 }
 0x49f   : > { %s1720_s12 = smov %s1545_s15  ;;  %23 = sbr.rel (!%p21_p12) target bundleno = 8 (0x8), region = 107 }
 0x4a3   : > { %s1719_s11 = smov %s1716_s14 }
 0x4a4   :  { %977 = vsyncpa [#allocation3], 1 }
 0x4a5   :  { %979 = vsyncpa [#allocation3 + $0x1], 1 }
 0x4a6   :  { %980 = vsyncpa [#allocation6], 1 }
 0x4a7   :  { %981 = vsyncpa [#allocation4], 1 }
 0x4a8   :  { %983 = vsyncpa [#allocation4 + $0x1], 1 }

</bundles_post_ra>
